<compile_context>
chip_gen: v7x
topology: tpu7x:2x2x1
jax: 0.10.0
libtpu: 0.0.40
codegen_flags: <defaults>
</compile_context>

<pallas_src>
import math
from functools import partial

import jax
import jax.numpy as jnp
from jax import lax
from jax.experimental import pallas as pl
from jax.experimental.pallas import tpu as pltpu


def _round_up(x, k):
    return ((x + k - 1) // k) * k


def _qk_kernel(q_ref, k_ref, wq_ref, bq_ref, wk_ref, bk_ref, o_ref,
               qproj_sc, kproj_sc, *, tm):
    # Refs per grid step (bi, ni, mi):
    #   q_ref  : (1, tn, d)      bf16  (block of queries for this n-tile)
    #   k_ref  : (1, m_pad, d)   bf16  (all keys of this batch element;
    #                                   block index constant over ni/mi -> DMA'd
    #                                   once per batch element)
    #   wq_ref, wk_ref : (d, d)  bf16  PyTorch [out, in] layout (Wq pre-scaled)
    #   bq_ref, bk_ref : (1, d)  f32
    #   o_ref  : (1, tn, tm)     f32
    #   qproj_sc : (tn, d)     bf16 scratch  (q_proj for current (b, n_tile))
    #   kproj_sc : (m_pad, d)  bf16 scratch  (k_proj for current batch element)
    ni = pl.program_id(1)
    mi = pl.program_id(2)

    # k_proj once per batch element (first n-tile, first m-tile).
    @pl.when(jnp.logical_and(ni == 0, mi == 0))
    def _():
        kp = lax.dot_general(
            k_ref[0], wk_ref[...],
            dimension_numbers=(((1,), (1,)), ((), ())),   # x @ W^T, no transpose
            preferred_element_type=jnp.float32) + bk_ref[...]
        kproj_sc[...] = kp.astype(kproj_sc.dtype)

    # q_proj once per (batch, n-tile); scale already folded into Wq / bq.
    @pl.when(mi == 0)
    def _():
        qp = lax.dot_general(
            q_ref[0], wq_ref[...],
            dimension_numbers=(((1,), (1,)), ((), ())),
            preferred_element_type=jnp.float32) + bq_ref[...]
        qproj_sc[...] = qp.astype(qproj_sc.dtype)

    # Score tile: contract over d with the transposed contracting dim on the
    # cached k_proj slice (no materialized transpose), f32 accumulation.
    off = pl.multiple_of(mi * tm, tm)
    k_tile = kproj_sc[pl.ds(off, tm), :]                  # (tm, d) bf16
    scores = lax.dot_general(
        qproj_sc[...], k_tile,
        dimension_numbers=(((1,), (1,)), ((), ())),
        preferred_element_type=jnp.float32)               # (tn, tm) f32
    o_ref[0] = scores.astype(o_ref.dtype)


def qk_block(queries, keys, wq, bq, wk, bk, h, *, tn=256, tm=512):
    """queries: [b, n, d], keys: [b, m, d]. Returns [b, n, m] (float32)."""
    b, n, d = queries.shape
    _, m, _ = keys.shape
    assert d % h == 0
    p = d // h
    scale = 1.0 / (h * math.sqrt(p))

    # Tile sizes: sublane-aligned n-tiles, lane-dense m-tiles (multiple of 128).
    tn = min(tn, _round_up(n, 8))
    tm = min(tm, _round_up(m, 128))
    n_pad = _round_up(n, tn)
    m_pad = _round_up(m, tm)

    # bf16 MXU operands; padded rows/cols are sliced off after the call.
    q_in = queries.astype(jnp.bfloat16)
    k_in = keys.astype(jnp.bfloat16)
    if n_pad != n:
        q_in = jnp.pad(q_in, ((0, 0), (0, n_pad - n), (0, 0)))
    if m_pad != m:
        k_in = jnp.pad(k_in, ((0, 0), (0, m_pad - m), (0, 0)))

    # Keep PyTorch [out, in] weight layout (no host-side transpose); fold the
    # head-mean + temperature scale into the query projection parameters.
    wq_b = (wq * scale).astype(jnp.bfloat16)
    wk_b = wk.astype(jnp.bfloat16)
    bq2 = (bq * scale).reshape(1, d).astype(jnp.float32)
    bk2 = bk.reshape(1, d).astype(jnp.float32)

    grid = (b, n_pad // tn, m_pad // tm)
    kernel = partial(_qk_kernel, tm=tm)

    out = pl.pallas_call(
        kernel,
        out_shape=jax.ShapeDtypeStruct((b, n_pad, m_pad), jnp.float32),
        grid_spec=pltpu.PrefetchScalarGridSpec(
            num_scalar_prefetch=0,
            grid=grid,
            in_specs=[
                pl.BlockSpec((1, tn, d), lambda bi, ni, mi: (bi, ni, 0)),     # queries
                pl.BlockSpec((1, m_pad, d), lambda bi, ni, mi: (bi, 0, 0)),   # keys (full per batch elem)
                pl.BlockSpec((d, d), lambda bi, ni, mi: (0, 0)),              # Wq (scaled, [out,in])
                pl.BlockSpec((1, d), lambda bi, ni, mi: (0, 0)),              # bq (scaled)
                pl.BlockSpec((d, d), lambda bi, ni, mi: (0, 0)),              # Wk ([out,in])
                pl.BlockSpec((1, d), lambda bi, ni, mi: (0, 0)),              # bk
            ],
            out_specs=pl.BlockSpec((1, tn, tm), lambda bi, ni, mi: (bi, ni, mi)),
            scratch_shapes=[
                pltpu.VMEM((tn, d), jnp.bfloat16),      # cached q_proj (per n-tile)
                pltpu.VMEM((m_pad, d), jnp.bfloat16),   # cached k_proj (per batch elem)
            ],
        ),
        compiler_params=pltpu.CompilerParams(
            # n/m tile axes carry scratch reuse -> must be "arbitrary";
            # batch axis is independent -> "parallel" (megacore / v7x 2-TC).
            dimension_semantics=("parallel", "arbitrary", "arbitrary"),
            # Explicit budget with headroom under v7x's 64 MiB physical VMEM.
            vmem_limit_bytes=48 * 1024 * 1024,
        ),
    )(q_in, k_in, wq_b, bq2, wk_b, bk2)

    if n_pad != n or m_pad != m:
        out = out[:, :n, :m]
    return out


def qk_block_ref(queries, keys, wq, bq, wk, bk, h):
    """Pure-JAX f32 reference mirroring the PyTorch forward step-by-step."""
    b, n, d = queries.shape
    _, m, _ = keys.shape
    p = d // h
    qp = queries @ wq.T + bq                           # [b, n, d]
    kp = keys @ wk.T + bk                              # [b, m, d]
    qh = qp.reshape(b, n, h, p).transpose(2, 0, 1, 3)  # [h, b, n, p]
    kh = kp.reshape(b, m, h, p).transpose(2, 0, 1, 3)  # [h, b, m, p]
    scores = jnp.einsum("hbnp,hbmp->hbnm", qh, kh) / math.sqrt(p)
    return scores.transpose(1, 2, 0, 3).mean(axis=2)   # [b, n, m]


if __name__ == "__main__":
    # Small, module-consistent shapes: d must be divisible by h.
    b, n, m, d, h = 2, 8, 8, 32, 4

    key = jax.random.PRNGKey(0)
    kq, kk, kwq, kbq, kwk, kbk = jax.random.split(key, 6)

    queries = jax.random.normal(kq, (b, n, d), dtype=jnp.float32)
    keys = jax.random.normal(kk, (b, m, d), dtype=jnp.float32)

    # Deterministic Linear(d, d) params (PyTorch convention: weight [out, in]).
    bound = 1.0 / math.sqrt(d)
    wq = jax.random.uniform(kwq, (d, d), jnp.float32, -bound, bound)
    bq = jax.random.uniform(kbq, (d,), jnp.float32, -bound, bound)
    wk = jax.random.uniform(kwk, (d, d), jnp.float32, -bound, bound)
    bk = jax.random.uniform(kbk, (d,), jnp.float32, -bound, bound)

    out = qk_block(queries, keys, wq, bq, wk, bk, h)
    out = jax.block_until_ready(out)

    ref = qk_block_ref(queries, keys, wq, bq, wk, bk, h)
    assert out.shape == (b, n, m), out.shape
    # bf16 MXU operands -> loosened tolerance vs. the f32 reference.
    assert jnp.allclose(out, ref, atol=5e-2, rtol=5e-2), float(
        jnp.max(jnp.abs(out - ref)))

    print("KERNEL_OK")
</pallas_src>

<mosaic_0001>
module attributes {stable_mosaic.version = 11 : i64} {
  func.func @_qk_kernel(%arg0: i32, %arg1: i32, %arg2: i32, %arg3: memref<1x8x32xbf16, #tpu.memory_space<vmem>>, %arg4: memref<1x128x32xbf16, #tpu.memory_space<vmem>>, %arg5: memref<32x32xbf16, #tpu.memory_space<vmem>>, %arg6: memref<1x32xf32, #tpu.memory_space<vmem>>, %arg7: memref<32x32xbf16, #tpu.memory_space<vmem>>, %arg8: memref<1x32xf32, #tpu.memory_space<vmem>>, %arg9: memref<1x8x128xf32, #tpu.memory_space<vmem>>, %arg10: memref<8x32xbf16, #tpu.memory_space<vmem>>, %arg11: memref<128x32xbf16, #tpu.memory_space<vmem>>) attributes {dimension_semantics = [#tpu.dimension_semantics<parallel>, #tpu.dimension_semantics<arbitrary>, #tpu.dimension_semantics<arbitrary>], iteration_bounds = array<i64: 2, 1, 1>, scalar_prefetch = 0 : i64, scratch_operands = 2 : i64, tpu.core_type = #tpu.core_type<tc>, window_params = [{transform_indices = @transform_0, window_bounds = array<i64: 1, 8, 32>}, {transform_indices = @transform_1, window_bounds = array<i64: 1, 128, 32>}, {pipeline_mode = #tpu.pipeline_mode<synchronous>, transform_indices = @transform_2, window_bounds = array<i64: 32, 32>}, {pipeline_mode = #tpu.pipeline_mode<synchronous>, transform_indices = @transform_3, window_bounds = array<i64: 1, 32>}, {pipeline_mode = #tpu.pipeline_mode<synchronous>, transform_indices = @transform_4, window_bounds = array<i64: 32, 32>}, {pipeline_mode = #tpu.pipeline_mode<synchronous>, transform_indices = @transform_5, window_bounds = array<i64: 1, 32>}, {transform_indices = @transform_6, window_bounds = array<i64: 1, 8, 128>}]} {
    %c0_i32 = arith.constant 0 : i32
    %0 = arith.cmpi eq, %arg1, %c0_i32 : i32
    %c0_i32_0 = arith.constant 0 : i32
    %1 = arith.cmpi eq, %arg2, %c0_i32_0 : i32
    %2 = arith.andi %0, %1 : i1
    %3 = arith.extui %2 : i1 to i32
    %c0_i32_1 = arith.constant 0 : i32
    %4 = arith.cmpi ne, %3, %c0_i32_1 : i32
    scf.if %4 {
      %c0_9 = arith.constant 0 : index
      %c0_10 = arith.constant 0 : index
      %c0_11 = arith.constant 0 : index
      %17 = vector.load %arg4[%c0_9, %c0_10, %c0_11] : memref<1x128x32xbf16, #tpu.memory_space<vmem>>, vector<1x128x32xbf16>
      %18 = vector.shape_cast %17 : vector<1x128x32xbf16> to vector<128x32xbf16>
      %c0_12 = arith.constant 0 : index
      %c0_13 = arith.constant 0 : index
      %19 = vector.load %arg7[%c0_12, %c0_13] : memref<32x32xbf16, #tpu.memory_space<vmem>>, vector<32x32xbf16>
      %cst_14 = arith.constant dense<0.000000e+00> : vector<128x32xf32>
      %20 = tpu.matmul %18, %19, %cst_14 {dimension_numbers = #tpu.dot_dimension_numbers<[1], [1], [0], [0], [0, 0, 1, 0], [], []>} : vector<128x32xbf16>, vector<32x32xbf16>, vector<128x32xf32> -> vector<128x32xf32>
      %c0_15 = arith.constant 0 : index
      %c0_16 = arith.constant 0 : index
      %21 = vector.load %arg8[%c0_15, %c0_16] : memref<1x32xf32, #tpu.memory_space<vmem>>, vector<1x32xf32>
      %22 = vector.broadcast %21 : vector<1x32xf32> to vector<128x32xf32>
      %23 = arith.addf %20, %22 : vector<128x32xf32>
      %24 = arith.truncf %23 : vector<128x32xf32> to vector<128x32xbf16>
      %c0_17 = arith.constant 0 : index
      %c0_18 = arith.constant 0 : index
      %25 = vector.load %arg11[%c0_17, %c0_18] : memref<128x32xbf16, #tpu.memory_space<vmem>>, vector<128x32xbf16>
      tpu.vector_store %arg11[%c0_17, %c0_18], %24 {strides = array<i32>} : memref<128x32xbf16, #tpu.memory_space<vmem>>, vector<128x32xbf16>,
    } else {
    }
    %c0_i32_2 = arith.constant 0 : i32
    %5 = arith.cmpi eq, %arg2, %c0_i32_2 : i32
    %6 = arith.extui %5 : i1 to i32
    %c0_i32_3 = arith.constant 0 : i32
    %7 = arith.cmpi ne, %6, %c0_i32_3 : i32
    scf.if %7 {
      %c0_9 = arith.constant 0 : index
      %c0_10 = arith.constant 0 : index
      %c0_11 = arith.constant 0 : index
      %17 = vector.load %arg3[%c0_9, %c0_10, %c0_11] : memref<1x8x32xbf16, #tpu.memory_space<vmem>>, vector<1x8x32xbf16>
      %18 = vector.shape_cast %17 : vector<1x8x32xbf16> to vector<8x32xbf16>
      %c0_12 = arith.constant 0 : index
      %c0_13 = arith.constant 0 : index
      %19 = vector.load %arg5[%c0_12, %c0_13] : memref<32x32xbf16, #tpu.memory_space<vmem>>, vector<32x32xbf16>
      %cst_14 = arith.constant dense<0.000000e+00> : vector<8x32xf32>
      %20 = tpu.matmul %18, %19, %cst_14 {dimension_numbers = #tpu.dot_dimension_numbers<[1], [1], [0], [0], [0, 0, 1, 0], [], []>} : vector<8x32xbf16>, vector<32x32xbf16>, vector<8x32xf32> -> vector<8x32xf32>
      %c0_15 = arith.constant 0 : index
      %c0_16 = arith.constant 0 : index
      %21 = vector.load %arg6[%c0_15, %c0_16] : memref<1x32xf32, #tpu.memory_space<vmem>>, vector<1x32xf32>
      %22 = vector.broadcast %21 : vector<1x32xf32> to vector<8x32xf32>
      %23 = arith.addf %20, %22 : vector<8x32xf32>
      %24 = arith.truncf %23 : vector<8x32xf32> to vector<8x32xbf16>
      %c0_17 = arith.constant 0 : index
      %c0_18 = arith.constant 0 : index
      %25 = vector.load %arg10[%c0_17, %c0_18] : memref<8x32xbf16, #tpu.memory_space<vmem>>, vector<8x32xbf16>
      tpu.vector_store %arg10[%c0_17, %c0_18], %24 {strides = array<i32>} : memref<8x32xbf16, #tpu.memory_space<vmem>>, vector<8x32xbf16>,
    } else {
    }
    %c128_i32 = arith.constant 128 : i32
    %8 = arith.muli %arg2, %c128_i32 : i32
    %9 = tpu.assume_multiple %8, 128 : i32
    %10 = arith.index_cast %9 : i32 to index
    %c0 = arith.constant 0 : index
    %11 = vector.load %arg11[%10, %c0] : memref<128x32xbf16, #tpu.memory_space<vmem>>, vector<128x32xbf16>
    %c0_4 = arith.constant 0 : index
    %c0_5 = arith.constant 0 : index
    %12 = vector.load %arg10[%c0_4, %c0_5] : memref<8x32xbf16, #tpu.memory_space<vmem>>, vector<8x32xbf16>
    %cst = arith.constant dense<0.000000e+00> : vector<8x128xf32>
    %13 = tpu.matmul %12, %11, %cst {dimension_numbers = #tpu.dot_dimension_numbers<[1], [1], [0], [0], [0, 0, 1, 0], [], []>} : vector<8x32xbf16>, vector<128x32xbf16>, vector<8x128xf32> -> vector<8x128xf32>
    %c0_6 = arith.constant 0 : index
    %c0_7 = arith.constant 0 : index
    %c0_8 = arith.constant 0 : index
    %14 = vector.load %arg9[%c0_6, %c0_7, %c0_8] : memref<1x8x128xf32, #tpu.memory_space<vmem>>, vector<1x8x128xf32>
    %15 = vector.shape_cast %14 : vector<1x8x128xf32> to vector<8x128xf32>
    %16 = vector.shape_cast %13 : vector<8x128xf32> to vector<1x8x128xf32>
    tpu.vector_store %arg9[%c0_6, %c0_7, %c0_8], %16 {strides = array<i32>} : memref<1x8x128xf32, #tpu.memory_space<vmem>>, vector<1x8x128xf32>,
    return
  }
  func.func @transform_0(%arg0: i32, %arg1: i32, %arg2: i32) -> (i32, i32, i32) {
    %c0_i32 = arith.constant 0 : i32
    %c0_i32_0 = arith.constant 0 : i32
    return %arg0, %arg1, %c0_i32 : i32, i32, i32
  }
  func.func @transform_1(%arg0: i32, %arg1: i32, %arg2: i32) -> (i32, i32, i32) {
    %c0_i32 = arith.constant 0 : i32
    %c0_i32_0 = arith.constant 0 : i32
    %c0_i32_1 = arith.constant 0 : i32
    return %arg0, %c0_i32, %c0_i32_0 : i32, i32, i32
  }
  func.func @transform_2(%arg0: i32, %arg1: i32, %arg2: i32) -> (i32, i32) {
    %c0_i32 = arith.constant 0 : i32
    %c0_i32_0 = arith.constant 0 : i32
    %c0_i32_1 = arith.constant 0 : i32
    return %c0_i32, %c0_i32_0 : i32, i32
  }
  func.func @transform_3(%arg0: i32, %arg1: i32, %arg2: i32) -> (i32, i32) {
    %c0_i32 = arith.constant 0 : i32
    %c0_i32_0 = arith.constant 0 : i32
    %c0_i32_1 = arith.constant 0 : i32
    return %c0_i32, %c0_i32_0 : i32, i32
  }
  func.func @transform_4(%arg0: i32, %arg1: i32, %arg2: i32) -> (i32, i32) {
    %c0_i32 = arith.constant 0 : i32
    %c0_i32_0 = arith.constant 0 : i32
    %c0_i32_1 = arith.constant 0 : i32
    return %c0_i32, %c0_i32_0 : i32, i32
  }
  func.func @transform_5(%arg0: i32, %arg1: i32, %arg2: i32) -> (i32, i32) {
    %c0_i32 = arith.constant 0 : i32
    %c0_i32_0 = arith.constant 0 : i32
    %c0_i32_1 = arith.constant 0 : i32
    return %c0_i32, %c0_i32_0 : i32, i32
  }
  func.func @transform_6(%arg0: i32, %arg1: i32, %arg2: i32) -> (i32, i32, i32) {
    %c0_i32 = arith.constant 0 : i32
    return %arg0, %arg1, %arg2 : i32, i32, i32
  }
}

</mosaic_0001>

<bundles_post_ra>
// kernel: tpu_custom_call.1
= control target key start
LH: loop header
LB: loop body
LE: loop exit
PB: predicated region body
PF: predicated region fallthrough
CT: control target
= control target key end

     0   :  { %11 = vsyncpa [#allocation5], 0  ;;  %s1275_s0 = inlined_call_operand.vmem [shape: bf16[2,8,32], index: 0, kind: input, shape index: {}]   ;;  %s1276_s1 = inlined_call_operand.vmem [shape: bf16[2,128,32], index: 1, kind: input, shape index: {}]   ;;  %s1277_s2 = inlined_call_operand.vmem [shape: bf16[32,32], index: 2, kind: input, shape index: {}]   ;;  %s1278_s3 = inlined_call_operand.vmem [shape: f32[1,32], index: 3, kind: input, shape index: {}]   ;;  %s1279_s4 = inlined_call_operand.vmem [shape: bf16[32,32], index: 4, kind: input, shape index: {}]   ;;  %s1280_s5 = inlined_call_operand.vmem [shape: f32[1,32], index: 5, kind: input, shape index: {}]   ;;  %s1281_s6 = inlined_call_operand.hbm [shape: f32[2,8,128], index: 6, kind: output, shape index: {}]  }
   0x1   :  { %13 = vsyncpa [#allocation5 + $0x1], 0  ;;  %s1092_s21 = smov 0   ;;  %s1094_s22 = smov 0  }
   0x2   :  { %s1096_s23 = smov 0   ;;  %s1098_s24 = smov 0  }
   0x3   :  { %s1100_s25 = smov 0   ;;  %s1102_s26 = smov 0  }
   0x4 LB: > { %s795_s27 = sadd.s32 4294967295, %s1052_s26   ;;  %s796_s28 = sadd.s32 4294967294, %s1052_s26   ;;  %s1052_s26 = sphi %s1102_s26, %s19_s26   ;;  %s1048_s25 = sphi %s1100_s25, %s1288_s25   ;;  %s1044_s24 = sphi %s1098_s24, %s1287_s24   ;;  %s1040_s23 = sphi %s1096_s23, %s1286_s23   ;;  %s1036_s22 = sphi %s1094_s22, %s1285_s22   ;;  %s1032_s21 = sphi %s1092_s21, %s1284_s21  }
   0x5   : > { %s38_s29 = sadd.s32 1, %s1048_s25  ;;  %s187_s30 = sadd.s32 1, %s1040_s23 }
   0x6   : > { %p40_p0 = scmp.ge.s32.totalorder %s38_s29, 2  ;;  %p197_p1 = scmp.ne.s32.totalorder %s1040_s23, %s1036_s22 }
   0x7   : > { %p198_p2 = scmp.eq.s32.totalorder %s795_s27, 1  ;;  %p203_p3 = scmp.ne.s32.totalorder %s1036_s22, %s1032_s21 }
   0x8   : > { %s1290_s29 = smov (%p40_p0, %s38_s29), 0  ;;  %p204_p5 = scmp.eq.s32.totalorder %s796_s28, 1 }
   0x9   : > { %p1132_p4 = por %p198_p2, %p197_p1  ;;  %s180_s8 = ssub.s32 %s1048_s25, %s1290_s29 }
   0xa   : > { %p799_p6 = scmp.ge.s32.totalorder %s1052_s26, 1  ;;  %p185_p7 = scmp.eq.s32.totalorder %s180_s8, 0 }
   0xb   : > { %p1139_p8 = por %p204_p5, %p203_p3  ;;  %p252_p9 = scmp.lt.s32.totalorder %s1052_s26, 3 }
   0xc   : > { %s1145_s10 = scalar_select %p185_p7, %s1040_s23, %s187_s30  }
   0xd   : > { %p253_p10 = pnand %p799_p6, %p252_p9 }
   0xe   : > { %v962_v0 = vld [vmem:[%s1279_s4] sm:$0xff] (!%p253_p10)   ;;  %vm385_vm0 = vcmask (!%p253_p10), 261120   ;;  %v963_v1 = vld [vmem:[%s1279_s4 + $0x8] sm:$0xff] (!%p253_p10)   ;;  %p289_p11 = scmp.lt.s32.totalorder (!%p253_p10), %s1044_s24, 1  ;;  %v1054_v3 = vmov (!%p253_p10), 0.0   ;;  %vm1055_vm1 = vmmov (!%p253_p10), 0  }
   0xf   : > { %256 = sbr.rel (%p253_p10) target bundleno = 549 (0x225), region = 44  ;;  %903 = vmatprep.subr.msk.bf16.mxu1 (!%p253_p10), %vm385_vm0, %v962_v0  ;;  %v411_v2 = vsel (!%p253_p10), %vm385_vm0, %v962_v0, 0  ;;  %883 = vmatprep.subr.bf16.mxu0 (!%p253_p10), %v1054_v3  ;;  %v414_v5 = vsel (!%p253_p10), %vm385_vm0, %v963_v1, 0  ;;  %v970_v6 = vld [vmem:[%s1277_s2] sm:$0xff] (!%p253_p10)   ;;  %v973_v10 = vld [vmem:[%s1277_s2 + $0x8] sm:$0xff] (!%p253_p10)   ;;  %vm605_vm2 = vcmask (!%p253_p10), 257024  }
  0x10   : > { %856 = vmatpush3.bf16.xpose.msra.mxu1 (!%p253_p10), %v411_v2  ;;  %899 = vmatprep.mubr.msk.bf16.mxu0 (!%p253_p10), %vm1055_vm1, %v1054_v3  ;;  %v559_v9 = vsel (!%p253_p10), %vm385_vm0, %v970_v6, 0  ;;  %v562_v13 = vsel (!%p253_p10), %vm385_vm0, %v973_v10, 0  ;;  %v804_v19 = vld [vmem:[%s1280_s5] ss:$0 sm:$0xff] (!%p253_p10)  ;;  %s286_s18 = sand.u32 (!%p253_p10), 1, %s1036_s22   ;;  %s829_s28 = sshll.u32 (!%p253_p10), %s1044_s24, 7 }
  0x11   : > { %904 = vmatprep.subr.msk.bf16.mxu1 (!%p253_p10), %vm385_vm0, %v963_v1  ;;  %v823_v0 = vld [vmem:[%s1278_s3] ss:$0 sm:$0xff] (!%p253_p10)  ;;  %s1230_s11 = scalar_lea.hbm (!%p253_p10), %s1281_s6, %s829_s28  ;;  %s691_s12 = scalar_lea.sflag (!%p253_p10), [#allocation5], %s286_s18 }
  0x16   : > { %s1157_s15 = scalar_select %p289_p11, %s1044_s24, 1 }
  0x17   : > { %s1056_s24 = smov [#allocation4]  }
  0x18   : > { %s832_s16 = sshll.u32 %s1157_s15, 6  ;;  %858 = vmatpush3.bf16.xpose.msra.mxu1 %v414_v5  ;;  %s801_s8 = sshll.u32 %s1157_s15, 2 }
  0x19   : > { %s300_s19 = scalar_lea.vmem %s1276_s1, %s832_s16  ;;  %875 = vmatprep.subr.bf16.mxu1 %v1054_v3  ;;  %s295_s13 = scalar_lea.vmem %s1275_s0, %s801_s8 }
  0x1a   : > { %v964_v4 = vld [vmem:[%s300_s19] sm:$0xff]   ;;  %v965_v7 = vld [vmem:[%s300_s19 + $0x8] sm:$0xff]   ;;  %v966_v8 = vld [vmem:[%s300_s19 + $0x10] sm:$0xff]   ;;  %s978_s14 = sshll.u32 %s1056_s24, 4  ;;  %s979_s14 = int_to_ptr.vmem [resolvable:$false] %s978_s14 }
  0x1b   : > { %859 = vmatprep.mubr.msk.bf16.mxu1 %vm385_vm0, %v964_v4  ;;  %v967_v11 = vld [vmem:[%s300_s19 + $0x18] sm:$0xff]   ;;  %v968_v12 = vld [vmem:[%s300_s19 + $0x20] sm:$0xff]   ;;  %v969_v14 = vld [vmem:[%s300_s19 + $0x28] sm:$0xff]   ;;  %s980_s16 = scalar_lea.vmem %s979_s14, 256 }
  0x1c   : > { %v971_v15 = vld [vmem:[%s300_s19 + $0x30] sm:$0xff]   ;;  %v972_v16 = vld [vmem:[%s300_s19 + $0x38] sm:$0xff]   ;;  %v532_v17 = vld [vmem:[%s295_s13] sm:$0xf]  ;;  %s800_s19 = sshll.u32 %s286_s18, 3 }
  0x1d   : > { %s288_s20 = scalar_lea.vmem [#allocation4], %s800_s19 }
  0x1e   : > { %s706_s27 = sshll.u32 %s288_s20, 4  ;;  %s1225_s27 = int_to_ptr.vmem [resolvable:$true] %s706_s27 }
  0x1f   : > { %860 = vmatmul.mubr.msk.bf16.vlgmr.msra.gmra.mrb[0].mxu1 %vm385_vm0, %v965_v7  ;;  %s974_s13 = scalar_lea.vmem %s1225_s27, 128  ;;  %p981_p1 = scmp.lt.s32.totalorder %s1225_s27, %s979_s14 }
  0x20   : > { %863 = vmatprep.mubr.msk.bf16.mxu1 %vm385_vm0, %v966_v8  ;;  %876 = vmatpush3.bf16.xpose.msra.mxu1 %v559_v9  ;;  %p975_p12 = scmp.ne.s32.totalorder %s1225_s27, %s974_s13  ;;  %p982_p2 = scmp.lt.s32.totalorder %s980_s16, %s974_s13 }
  0x21   : > { %877 = vmatprep.subr.bf16.mxu1 %v1054_v3 }
  0x22   : > { %p976_p13 = pnand %p975_p12, %p1132_p4  ;;  %p983_p3 = por %p982_p2, %p981_p1 }
  0x24   : > { %p977_p0 = pneg %p976_p13 }
  0x26   : > { %p984_p5 = pnand %p983_p3, %p977_p0 }
  0x27   : > { %864 = vmatmul.mubr.msk.bf16.gmra.mrb[4].mxu1 %vm385_vm0, %v967_v11 }
  0x28   : > { %867 = vmatprep.mubr.msk.bf16.mxu1 %vm385_vm0, %v968_v12  ;;  %878 = vmatpush3.bf16.xpose.msra.mxu1 %v562_v13 }
  0x2f   : > { %868 = vmatmul.mubr.msk.bf16.gmra.mrb[8].mxu1 %vm385_vm0, %v969_v14 }
  0x30   : > { %871 = vmatprep.mubr.msk.bf16.mxu1 %vm385_vm0, %v971_v15 }
  0x37   : > { %872 = vmatmul.mubr.msk.bf16.gmra.mrb[12].mxu1 %vm385_vm0, %v972_v16 }
  0x38   : > { %879 = vmatprep.mubr.msk.bf16.mxu1 %vm1055_vm1, %v1054_v3 }
  0x3f   : > { %880 = vmatmul.mubr.msk.bf16.vlgmr.msra.gmra.mrb[16].mxu1 %vm385_vm0, %v532_v17 }
  0xf2   : > { %v861_v18 = vpop.f32.mrb[0].mxu1 }
  0xf3   : > { %v450_v20 = vpop.f32.mrb[1].mxu1  ;;  %v459_v22 = vadd.f32 %v861_v18, %v804_v19 }
  0xf4   : > { %v862_v21 = vpop.f32.mrb[2].mxu1  ;;  %v451_v25 = vadd.f32 %v804_v19, %v450_v20 }
  0xf5   : > { %v462_v23 = vadd.f32 %v862_v21, %v804_v19  ;;  %v453_v24 = vpop.f32.mrb[3].mxu1 }
  0xf6   : > { %v454_v26 = vadd.f32 %v804_v19, %v453_v24 }
  0xf7   : > { %v514_v27 = vpack.c.bf16 %v462_v23, %v459_v22 }
  0xf8   : > { %v513_v28 = vpack.c.bf16 %v454_v26, %v451_v25 }
  0xf9   : > { %522 = vst.msk [vmem:[#allocation3 + $0x8] sm:$0xff] %vm385_vm0, %v514_v27 }
  0xfa   : > { %521 = vst.msk [vmem:[#allocation3] sm:$0xff] %vm385_vm0, %v513_v28  ;;  %v865_v29 = vpop.f32.mrb[4].mxu1 }
  0xfb   : > { %v475_v30 = vadd.f32 %v865_v29, %v804_v19  ;;  %v466_v31 = vpop.f32.mrb[5].mxu1 }
  0xfc   : > { %v467_v32 = vadd.f32 %v804_v19, %v466_v31  ;;  %v866_v33 = vpop.f32.mrb[6].mxu1 }
  0xfd   : > { %v478_v34 = vadd.f32 %v866_v33, %v804_v19  ;;  %v469_v35 = vpop.f32.mrb[7].mxu1 }
  0xfe   : > { %v470_v36 = vadd.f32 %v804_v19, %v469_v35 }
  0xff   : > { %v516_v37 = vpack.c.bf16 %v478_v34, %v475_v30 }
 0x100   : > { %v515_v38 = vpack.c.bf16 %v470_v36, %v467_v32  ;;  %v613_v49 = vld [vmem:[#allocation3 + $0x8] sm:$0xff] }
 0x101   : > { %524 = vst.msk [vmem:[#allocation3 + $0x18] sm:$0xff] %vm385_vm0, %v516_v37  ;;  %v612_v39 = vld [vmem:[#allocation3] sm:$0xff]  ;;  %v629_v52 = vsel %vm385_vm0, %v613_v49, 0 }
 0x102   : > { %523 = vst.msk [vmem:[#allocation3 + $0x10] sm:$0xff] %vm385_vm0, %v515_v38  ;;  %v626_v40 = vsel %vm385_vm0, %v612_v39, 0  ;;  %v869_v41 = vpop.f32.mrb[8].mxu1 }
 0x103   : > { %884 = vmatpush3.bf16.xpose.msra.mxu0 %v626_v40  ;;  %v491_v42 = vadd.f32 %v869_v41, %v804_v19  ;;  %v482_v43 = vpop.f32.mrb[9].mxu1 }
 0x104   : > { %885 = vmatprep.subr.bf16.mxu0 %v1054_v3  ;;  %v483_v44 = vadd.f32 %v804_v19, %v482_v43  ;;  %v870_v45 = vpop.f32.mrb[10].mxu1 }
 0x105   : > { %v494_v46 = vadd.f32 %v870_v45, %v804_v19  ;;  %v485_v47 = vpop.f32.mrb[11].mxu1 }
 0x106   : > { %v486_v48 = vadd.f32 %v804_v19, %v485_v47 }
 0x107   : > { %v518_v50 = vpack.c.bf16 %v494_v46, %v491_v42 }
 0x108   : > { %v517_v51 = vpack.c.bf16 %v486_v48, %v483_v44  ;;  %v615_v9 = vld [vmem:[#allocation3 + $0x18] sm:$0xff] }
 0x109   : > { %526 = vst.msk [vmem:[#allocation3 + $0x28] sm:$0xff] %vm385_vm0, %v518_v50  ;;  %v614_v61 = vld [vmem:[#allocation3 + $0x10] sm:$0xff]  ;;  %v635_v10 = vsel %vm385_vm0, %v615_v9, 0 }
 0x10a   : > { %525 = vst.msk [vmem:[#allocation3 + $0x20] sm:$0xff] %vm385_vm0, %v517_v51  ;;  %v873_v53 = vpop.f32.mrb[12].mxu1  ;;  %v632_v1 = vsel %vm385_vm0, %v614_v61, 0 }
 0x10b   : > { %886 = vmatpush3.bf16.xpose.msra.mxu0 %v629_v52  ;;  %v507_v54 = vadd.f32 %v873_v53, %v804_v19  ;;  %v498_v55 = vpop.f32.mrb[13].mxu1 }
 0x10c   : > { %887 = vmatprep.subr.bf16.mxu0 %v1054_v3  ;;  %v499_v56 = vadd.f32 %v804_v19, %v498_v55  ;;  %v874_v57 = vpop.f32.mrb[14].mxu1 }
 0x10d   : > { %v510_v58 = vadd.f32 %v874_v57, %v804_v19  ;;  %v501_v59 = vpop.f32.mrb[15].mxu1 }
 0x10e   : > { %v502_v60 = vadd.f32 %v804_v19, %v501_v59 }
 0x10f   : > { %v520_v62 = vpack.c.bf16 %v510_v58, %v507_v54 }
 0x110   : > { %v519_v63 = vpack.c.bf16 %v502_v60, %v499_v56  ;;  %v617_v13 = vld [vmem:[#allocation3 + $0x28] sm:$0xff] }
 0x111   : > { %528 = vst.msk [vmem:[#allocation3 + $0x38] sm:$0xff] %vm385_vm0, %v520_v62  ;;  %v616_v11 = vld [vmem:[#allocation3 + $0x20] sm:$0xff]  ;;  %v641_v14 = vsel %vm385_vm0, %v617_v13, 0 }
 0x112   : > { %527 = vst.msk [vmem:[#allocation3 + $0x30] sm:$0xff] %vm385_vm0, %v519_v63  ;;  %v598_v2 = vpop.f32.mrb[16].mxu1  ;;  %v638_v12 = vsel %vm385_vm0, %v616_v11, 0 }
 0x113   : > { %888 = vmatpush3.bf16.xpose.msra.mxu0 %v632_v1  ;;  %v599_v4 = vadd.f32 %v823_v0, %v598_v2  ;;  %v881_v5 = vpop.f32.mrb[17].mxu1 }
 0x114   : > { %889 = vmatprep.subr.bf16.mxu0 %v1054_v3  ;;  %v601_v6 = vpop.f32.mrb[18].mxu1 }
 0x115   : > { %v604_v7 = vpack.c.bf16 %v599_v4, %v599_v4  ;;  %v882_v8 = vpop.f32.mrb[19].mxu1 }
 0x117   : > { %606 = vst.msk [vmem:[#allocation2] sm:$0xf] %vm605_vm2, %v604_v7 }
 0x118   : > { %v619_v17 = vld [vmem:[#allocation3 + $0x38] sm:$0xff] }
 0x119   : > { %v618_v15 = vld [vmem:[#allocation3 + $0x30] sm:$0xff]  ;;  %v647_v18 = vsel %vm385_vm0, %v619_v17, 0 }
 0x11a   : > { %v644_v16 = vsel %vm385_vm0, %v618_v15, 0 }
 0x11b   : > { %890 = vmatpush3.bf16.xpose.msra.mxu0 %v635_v10 }
 0x11c   : > { %891 = vmatprep.subr.bf16.mxu0 %v1054_v3 }
 0x11e   : > { %v620_v19 = vld [vmem:[#allocation2] sm:$0xf] }
 0x123   : > { %892 = vmatpush3.bf16.xpose.msra.mxu0 %v638_v12 }
 0x124   : > { %893 = vmatprep.subr.bf16.mxu0 %v1054_v3 }
 0x12b   : > { %894 = vmatpush3.bf16.xpose.msra.mxu0 %v641_v14 }
 0x12c   : > { %895 = vmatprep.subr.bf16.mxu0 %v1054_v3 }
 0x133   : > { %896 = vmatpush3.bf16.xpose.msra.mxu0 %v644_v16 }
 0x134   : > { %897 = vmatprep.subr.bf16.mxu0 %v1054_v3 }
 0x13b   : > { %898 = vmatpush3.bf16.xpose.msra.mxu0 %v647_v18 }
 0x142   : > { %900 = vmatmul.mubr.msk.bf16.vlgmr.msra.gmra.mrb[0].mxu0 %vm385_vm0, %v620_v19 }
 0x215   : > { %v683_v3 = vpop.f32.mrb[0].mxu0 }
 0x216   : > { %689 = vst [vmem:[%s288_s20] sm:$0xff] %v683_v3  ;;  %v901_v20 = vpop.f32.mrb[1].mxu0 }
 0x217   : > { %v686_v21 = vpop.f32.mrb[2].mxu0 }
 0x218   : > { %987 = shalt.err (!%p984_p5)
}
 0x219   : > { %s988_s15 = scalar_lea.hbm %s1230_s11, 128  ;;  %s992_s19 = scalar_lea.hbm %s1281_s6, 256 }
 0x21a   : > { %p989_p6 = scmp.ne.s32.totalorder %s1230_s11, %s988_s15  ;;  %p993_p10 = scmp.lt.u32.totalorder %s1230_s11, %s1281_s6 }
 0x21b   : > { %p994_p11 = scmp.lt.u32.totalorder %s992_s19, %s988_s15  ;;  %p996_p13 = scmp.lt.u32.totalorder %s988_s15, %s1230_s11 }
 0x21c   : > { %p990_p7 = pnand %p989_p6, %p1132_p4 }
 0x21d   : > { %p995_p12 = por %p994_p11, %p993_p10 }
 0x21e   : > { %p991_p9 = pneg %p990_p7 }
 0x21f   : > { %p997_p0 = por %p996_p13, %p995_p12 }
 0x221   : > { %p998_p1 = pnand %p997_p0, %p991_p9 }
 0x223   : > { %1001 = shalt.err (!%p998_p1)
}
 0x224   : > { %905 = dma.vmem_to_hbm [thread:$0]  (%p1132_p4), %s1225_s27, 128, %s1230_s11, %s691_s12   ;;  %v902_v22 = vpop.f32.mrb[3].mxu0 }
 0x225 PF: > { %p911_p2 = scmp.ge.s32.totalorder %s1052_s26, 2  ;;  %s718_s30 = sand.u32 1, %s1032_s21  }
 0x226   : > { %s719_s8 = scalar_lea.sflag [#allocation5], %s718_s30 }
 0x227   : > { %p908_p3 = pnand %p911_p2, %p1139_p8 }
 0x229   : > { %1027 = dma.done.wait (!%p908_p3), %s719_s8, 128  }
 0x22a   : > { %1029 = vsyncadd (!%p908_p3), %s719_s8, 4294967168  ;;  %s19_s26 = sadd.s32 1, %s1052_s26   ;;  %s1284_s21 = smov %s1036_s22 }
 0x22b   : > { %p16_p5 = scmp.ge.s32.totalorder %s19_s26, 4   ;;  %s1285_s22 = smov %s1040_s23 }
 0x22c   : > { %s1286_s23 = smov %s1145_s10  ;;  %s1287_s24 = smov %s1048_s25 }
 0x22d   : > { %s1288_s25 = smov %s1290_s29  ;;  %18 = sbr.rel (!%p16_p5) target bundleno = 4 (0x4), region = 91 }
 0x234   :  { %724 = vsyncpa [#allocation5], 1 }
 0x235   :  { %726 = vsyncpa [#allocation5 + $0x1], 1 }

</bundles_post_ra>
